<compile_context>
chip_gen: v7x
topology: tpu7x:2x2x1
jax: 0.10.0
libtpu: 0.0.40
codegen_flags: <defaults>
</compile_context>

<pallas_src>
import functools

import jax
import jax.numpy as jnp
import numpy as np
from jax.experimental import pallas as pl
from jax.experimental.pallas import tpu as pltpu


# ----------------------------------------------------------------------------
# Fused Pallas kernel
# ----------------------------------------------------------------------------
def mbconv_kernel(*refs, num_blocks, strides, seq_lens, residuals, compute_dtype):
    """Fused MBConv stack for one batch tile.

    refs = [x, (w1, s0, wd, s1, w3, b3) * num_blocks, fin_sc, fin_sh, out]

      x      : (NB, L0, Cin)     input tile (compute_dtype)
      w1     : (Cin, CexpP)      1x1 expand weights, BN0 scale folded in
      s0     : (1, CexpP)        folded BN0 shift (incl. conv1 bias)
      wd     : (3, CexpP)        depthwise taps, BN1 scale folded in
      s1     : (1, CexpP)        folded BN1 shift (incl. conv2 bias)
      w3     : (CexpP, Cout)     1x1 project weights
      b3     : (1, Cout)         conv3 bias
      fin_*  : (1, Cout)         folded final BatchNorm scale / shift
    """
    x_ref = refs[0]
    fin_sc_ref = refs[1 + 6 * num_blocks]
    fin_sh_ref = refs[2 + 6 * num_blocks]
    out_ref = refs[3 + 6 * num_blocks]

    nb, l0, cin = x_ref.shape
    # Keep activations merged 2-D (NB*L, C): channels dense on the lane axis.
    x = x_ref[...].astype(jnp.float32).reshape(nb * l0, cin)

    prev_len = -1
    is_first = is_last = None
    for b in range(num_blocks):
        w1_ref, s0_ref, wd_ref, s1_ref, w3_ref, b3_ref = refs[1 + 6 * b:7 + 6 * b]
        l_in, l_out = seq_lens[b], seq_lens[b + 1]
        stride = strides[b]
        cexp = w1_ref.shape[1]
        rows_in = nb * l_in

        # --- conv1 (1x1 expand, BN0 folded) + ReLU6: one fat MXU matmul
        y1 = jnp.dot(x.astype(compute_dtype), w1_ref[...],
                     preferred_element_type=jnp.float32)
        y1 = jnp.clip(y1 + s0_ref[...], 0.0, 6.0)           # (NB*L, CexpP) f32

        # --- depthwise conv (k=3, pad=1, BN1 folded) + ReLU6, at stride 1.
        # Neighbour taps come from XLU sublane rolls; per-batch-item boundary
        # rows (the zero padding of each sequence) are masked to zero.
        if prev_len != l_in:
            row = jax.lax.broadcasted_iota(jnp.int32, (rows_in, 1), 0)
            is_first = (row % l_in) == 0
            is_last = (row % l_in) == (l_in - 1)
            prev_len = l_in
        wd = wd_ref[...]                                     # (3, CexpP) f32
        tap_l = jnp.where(is_first, 0.0, pltpu.roll(y1, 1, 0))
        tap_r = jnp.where(is_last, 0.0, pltpu.roll(y1, rows_in - 1, 0))
        z = tap_l * wd[0:1, :] + y1 * wd[1:2, :] + tap_r * wd[2:3, :]

        if stride != 1:
            # Subsample every stride-th row with a tile-friendly reshape +
            # aligned lane slice (no sublane-strided loads).
            if l_in == l_out * stride:
                z = z.reshape(nb * l_out, stride * cexp)[:, :cexp]
            else:
                pad = l_out * stride - l_in
                z3 = z.reshape(nb, l_in, cexp)
                z3 = jnp.concatenate(
                    [z3, jnp.zeros((nb, pad, cexp), jnp.float32)], axis=1)
                z = z3.reshape(nb * l_out, stride * cexp)[:, :cexp]
        y2 = jnp.clip(z + s1_ref[...], 0.0, 6.0)             # (NB*Lo, CexpP)

        # --- conv3 (1x1 project) [+ residual]
        y3 = jnp.dot(y2.astype(compute_dtype), w3_ref[...],
                     preferred_element_type=jnp.float32) + b3_ref[...]
        x = (x + y3) if residuals[b] else y3                 # (NB*Lo, Cout)

    # --- final BatchNorm1d (eval mode, folded to scale/shift), fused epilogue
    l_f = seq_lens[-1]
    y = x * fin_sc_ref[...] + fin_sh_ref[...]
    out_ref[...] = y.reshape(nb, l_f, y.shape[-1]).astype(out_ref.dtype)


# ----------------------------------------------------------------------------
# Parameter folding + wrapper
# ----------------------------------------------------------------------------
def _bn_fold(gamma, beta, mean, var, eps=1e-5):
    scale = gamma / jnp.sqrt(var + eps)
    return scale, beta - mean * scale


def fold_block_params(p, compute_dtype, lane=128):
    """Fold conv biases + eval-mode BN into weights / per-channel shifts.

    Cexp (the intermediate width) is zero-padded to a lane multiple so the
    expanded activation is lane-dense; padded channels stay exactly zero
    through BN-shift + ReLU6 + depthwise and contribute nothing to conv3.
    """
    cexp = p["w1"].shape[0]
    cexp_p = ((cexp + lane - 1) // lane) * lane
    pad = cexp_p - cexp

    sc0, sh0 = _bn_fold(**p["bn0"])
    sc1, sh1 = _bn_fold(**p["bn1"])
    w1t = p["w1"][:, :, 0].T * sc0[None, :]        # (Cin, Cexp)
    s0 = (p["b1"] * sc0 + sh0)[None, :]            # (1, Cexp)
    wd = p["wd"][:, 0, :].T * sc1[None, :]         # (3, Cexp)
    s1 = (p["bd"] * sc1 + sh1)[None, :]            # (1, Cexp)
    w3t = p["w3"][:, :, 0].T                       # (Cexp, Cout)
    b3 = p["b3"][None, :]                          # (1, Cout)
    if pad:
        w1t = jnp.pad(w1t, ((0, 0), (0, pad)))
        s0 = jnp.pad(s0, ((0, 0), (0, pad)))
        wd = jnp.pad(wd, ((0, 0), (0, pad)))
        s1 = jnp.pad(s1, ((0, 0), (0, pad)))
        w3t = jnp.pad(w3t, ((0, pad), (0, 0)))
    return {
        "w1": w1t.astype(compute_dtype),
        "s0": s0.astype(jnp.float32),
        "wd": wd.astype(jnp.float32),
        "s1": s1.astype(jnp.float32),
        "w3": w3t.astype(compute_dtype),
        "b3": b3.astype(jnp.float32),
    }


def _out_len(length, stride):
    return (length + 2 - 3) // stride + 1           # k=3, pad=1


def _padded_nbytes(arr):
    shape = tuple(arr.shape)
    if len(shape) < 2:
        r, c = 1, (shape[0] if shape else 1)
    else:
        r, c = int(np.prod(shape[:-1])), shape[-1]
    r = ((r + 7) // 8) * 8
    c = ((c + 127) // 128) * 128
    return r * c * arr.dtype.itemsize


def _vmem_capacity_bytes():
    try:
        return int(pltpu.get_tpu_info().vmem_capacity_bytes)
    except Exception:
        return 64 * 1024 * 1024                     # conservative (v7x per-core)


def _pick_batch_tile(n, l0, l_f, cin, cexp, cout, in_itemsize, weight_bytes):
    """Generation-aware batch tile: fit double-buffered tiles + weights in VMEM."""
    cap = _vmem_capacity_bytes()
    # <= ~75% of physical VMEM (=> <=48 MiB on v7x, <=~96 MiB on v5e/v6e),
    # capped for Mosaic-internal headroom.
    vmem_limit = min(cap * 3 // 4, 100 * 1024 * 1024)
    lane = lambda c: ((c + 127) // 128) * 128
    sub = lambda r: ((r + 7) // 8) * 8
    # per-batch-item footprint:
    #   2x double-buffered input tile + 2x double-buffered output tile
    #   + ~6 live f32 copies of the widest intermediate activation
    per_item = (2 * sub(l0) * lane(cin) * in_itemsize
                + 2 * sub(l_f) * lane(cout) * 4
                + 6 * sub(l0) * lane(cexp) * 4)
    budget = vmem_limit - 2 * weight_bytes          # weights are double-buffered too
    nb = max(1, min(n, budget // max(per_item, 1)))
    # Keep >=2 grid steps when possible: v7x shards the "parallel" batch axis
    # across its 2 TensorCores only if there are >=2 steps (cheap elsewhere).
    if nb >= n and n > 1:
        nb = (n + 1) // 2
    while n % nb:
        nb -= 1
    return int(nb), int(vmem_limit)


def mbconv_pallas(x_ncl, blocks, final_bn, compute_dtype=jnp.bfloat16):
    """x_ncl: (N, C, L) float32 (PyTorch layout). Returns (N, Cout, L_out)."""
    n, cin, l0 = x_ncl.shape
    strides = tuple(int(b["stride"]) for b in blocks)
    seq_lens = [l0]
    for s in strides:
        seq_lens.append(_out_len(seq_lens[-1], s))
    seq_lens = tuple(seq_lens)
    l_f = seq_lens[-1]

    kparams = [fold_block_params(b, compute_dtype) for b in blocks]
    cexps = {kp["w1"].shape[1] for kp in kparams}
    assert len(cexps) == 1, "all blocks must share the expansion width"
    cexp = cexps.pop()
    cout = kparams[-1]["w3"].shape[1]

    residuals = []
    c = cin
    for b, kp in zip(blocks, kparams):
        c_out_b = kp["w3"].shape[1]
        residuals.append(int(b["stride"]) == 1 and c == c_out_b)
        c = c_out_b
    residuals = tuple(residuals)

    fin_sc, fin_sh = final_bn
    fin_sc = fin_sc.reshape(1, cout).astype(jnp.float32)
    fin_sh = fin_sh.reshape(1, cout).astype(jnp.float32)

    weight_arrays = [kp[name] for kp in kparams
                     for name in ("w1", "s0", "wd", "s1", "w3", "b3")]
    weight_bytes = sum(_padded_nbytes(a) for a in weight_arrays + [fin_sc, fin_sh])

    in_dtype = compute_dtype                        # bf16 path halves the x DMA
    nb, vmem_limit = _pick_batch_tile(
        n, l0, l_f, cin, cexp, cout, np.dtype(in_dtype).itemsize, weight_bytes)

    x_nlc = jnp.transpose(x_ncl, (0, 2, 1)).astype(in_dtype)       # (N, L, C)

    in_specs = [pl.BlockSpec((nb, l0, cin), lambda i: (i, 0, 0))]
    inputs = [x_nlc]
    for kp in kparams:
        for name in ("w1", "s0", "wd", "s1", "w3", "b3"):
            arr = kp[name]
            in_specs.append(pl.BlockSpec(arr.shape, lambda i: (0, 0)))
            inputs.append(arr)
    for arr in (fin_sc, fin_sh):
        in_specs.append(pl.BlockSpec(arr.shape, lambda i: (0, 0)))
        inputs.append(arr)

    kernel = functools.partial(
        mbconv_kernel, num_blocks=len(blocks), strides=strides,
        seq_lens=seq_lens, residuals=residuals, compute_dtype=compute_dtype)

    out_nlc = pl.pallas_call(
        kernel,
        grid=(n // nb,),
        in_specs=in_specs,
        out_specs=pl.BlockSpec((nb, l_f, cout), lambda i: (i, 0, 0)),
        out_shape=jax.ShapeDtypeStruct((n, l_f, cout), jnp.float32),
        compiler_params=pltpu.CompilerParams(
            dimension_semantics=("parallel",),
            vmem_limit_bytes=vmem_limit),
    )(*inputs)

    return jnp.transpose(out_nlc, (0, 2, 1))                       # (N, Cout, Lo)


# ----------------------------------------------------------------------------
# Deterministic torch-shaped params + pure-JAX reference
# ----------------------------------------------------------------------------
def init_bottleneck(key, cin, cout, expansion, stride):
    cexp = cin * expansion
    ks = jax.random.split(key, 12)
    return {
        "stride": stride,
        "w1": jax.random.normal(ks[0], (cexp, cin, 1), jnp.float32) * 0.2,
        "b1": jax.random.normal(ks[1], (cexp,), jnp.float32) * 0.1,
        "wd": jax.random.normal(ks[2], (cexp, 1, 3), jnp.float32) * 0.2,
        "bd": jax.random.normal(ks[3], (cexp,), jnp.float32) * 0.1,
        "w3": jax.random.normal(ks[4], (cout, cexp, 1), jnp.float32) * 0.2,
        "b3": jax.random.normal(ks[5], (cout,), jnp.float32) * 0.1,
        "bn0": dict(gamma=jax.random.uniform(ks[6], (cexp,), minval=0.5, maxval=1.5),
                    beta=jax.random.normal(ks[7], (cexp,)) * 0.1,
                    mean=jax.random.normal(ks[8], (cexp,)) * 0.1,
                    var=jax.random.uniform(ks[9], (cexp,), minval=0.5, maxval=1.5)),
        "bn1": dict(gamma=jax.random.uniform(ks[10], (cexp,), minval=0.5, maxval=1.5),
                    beta=jax.random.normal(ks[11], (cexp,)) * 0.1,
                    mean=jnp.zeros((cexp,), jnp.float32),
                    var=jnp.ones((cexp,), jnp.float32)),
    }


def ref_conv1d(x, w, b, stride=1, padding=0, groups=1):
    out = jax.lax.conv_general_dilated(
        x, w, window_strides=(stride,), padding=[(padding, padding)],
        dimension_numbers=("NCH", "OIH", "NCH"), feature_group_count=groups)
    return out + b[None, :, None]


def ref_bn(x, gamma, beta, mean, var, eps=1e-5):
    return ((x - mean[None, :, None]) / jnp.sqrt(var[None, :, None] + eps)
            * gamma[None, :, None] + beta[None, :, None])


def ref_bottleneck(x, p):
    act = lambda v: jnp.clip(v, 0.0, 6.0)
    y = act(ref_bn(ref_conv1d(x, p["w1"], p["b1"]), **p["bn0"]))
    y = act(ref_bn(ref_conv1d(y, p["wd"], p["bd"], stride=p["stride"], padding=1,
                              groups=p["wd"].shape[0]), **p["bn1"]))
    y = ref_conv1d(y, p["w3"], p["b3"])
    return x + y if p["stride"] == 1 else y


def ref_mbconv(x, blocks, final_bn_raw):
    for blk in blocks:
        x = ref_bottleneck(x, blk)
    return ref_bn(x, **final_bn_raw)


# ----------------------------------------------------------------------------
if __name__ == "__main__":
    N, Cin, L = 2, 4, 16
    Cout, expansion, layers, stride = 8, 4, 3, 2

    key = jax.random.PRNGKey(0)
    kx, kb, kbn = jax.random.split(key, 3)
    x = jax.random.normal(kx, (N, Cin, L), jnp.float32)          # NCL, like PyTorch

    # MBConv stack: (layers-1) stride-1 blocks (Cin->Cin), then strided (Cin->Cout)
    bkeys = jax.random.split(kb, layers)
    blocks = [init_bottleneck(bkeys[i], Cin, Cin, expansion, 1)
              for i in range(layers - 1)]
    blocks.append(init_bottleneck(bkeys[-1], Cin, Cout, expansion, stride))

    fk = jax.random.split(kbn, 4)
    final_bn_raw = dict(
        gamma=jax.random.uniform(fk[0], (Cout,), minval=0.5, maxval=1.5),
        beta=jax.random.normal(fk[1], (Cout,)) * 0.1,
        mean=jax.random.normal(fk[2], (Cout,)) * 0.1,
        var=jax.random.uniform(fk[3], (Cout,), minval=0.5, maxval=1.5))
    final_bn = _bn_fold(**final_bn_raw)

    ref = jax.block_until_ready(ref_mbconv(x, blocks, final_bn_raw))

    # f32 matmul path: tight tolerance
    out_f32 = jax.block_until_ready(
        mbconv_pallas(x, blocks, final_bn, compute_dtype=jnp.float32))
    assert out_f32.shape == (N, Cout, (L + 2 - 3) // stride + 1), out_f32.shape
    np.testing.assert_allclose(np.asarray(out_f32), np.asarray(ref),
                               rtol=1e-3, atol=1e-3)

    # bf16 matmul path (MXU-friendly, f32 accumulation): looser tolerance
    out_bf16 = jax.block_until_ready(
        mbconv_pallas(x, blocks, final_bn, compute_dtype=jnp.bfloat16))
    np.testing.assert_allclose(np.asarray(out_bf16), np.asarray(ref),
                               rtol=5e-2, atol=5e-2)

    print("KERNEL_OK")
</pallas_src>

<mosaic_0001>
module attributes {stable_mosaic.version = 11 : i64} {
  func.func @mbconv_kernel(%arg0: i32, %arg1: memref<1x16x4xf32, #tpu.memory_space<vmem>>, %arg2: memref<4x128xf32, #tpu.memory_space<vmem>>, %arg3: memref<1x128xf32, #tpu.memory_space<vmem>>, %arg4: memref<3x128xf32, #tpu.memory_space<vmem>>, %arg5: memref<1x128xf32, #tpu.memory_space<vmem>>, %arg6: memref<128x4xf32, #tpu.memory_space<vmem>>, %arg7: memref<1x4xf32, #tpu.memory_space<vmem>>, %arg8: memref<4x128xf32, #tpu.memory_space<vmem>>, %arg9: memref<1x128xf32, #tpu.memory_space<vmem>>, %arg10: memref<3x128xf32, #tpu.memory_space<vmem>>, %arg11: memref<1x128xf32, #tpu.memory_space<vmem>>, %arg12: memref<128x4xf32, #tpu.memory_space<vmem>>, %arg13: memref<1x4xf32, #tpu.memory_space<vmem>>, %arg14: memref<4x128xf32, #tpu.memory_space<vmem>>, %arg15: memref<1x128xf32, #tpu.memory_space<vmem>>, %arg16: memref<3x128xf32, #tpu.memory_space<vmem>>, %arg17: memref<1x128xf32, #tpu.memory_space<vmem>>, %arg18: memref<128x8xf32, #tpu.memory_space<vmem>>, %arg19: memref<1x8xf32, #tpu.memory_space<vmem>>, %arg20: memref<1x8xf32, #tpu.memory_space<vmem>>, %arg21: memref<1x8xf32, #tpu.memory_space<vmem>>, %arg22: memref<1x8x8xf32, #tpu.memory_space<vmem>>) attributes {dimension_semantics = [#tpu.dimension_semantics<parallel>], iteration_bounds = array<i64: 2>, scalar_prefetch = 0 : i64, scratch_operands = 0 : i64, tpu.core_type = #tpu.core_type<tc>, window_params = [{transform_indices = @transform_0, window_bounds = array<i64: 1, 16, 4>}, {pipeline_mode = #tpu.pipeline_mode<synchronous>, transform_indices = @transform_1, window_bounds = array<i64: 4, 128>}, {pipeline_mode = #tpu.pipeline_mode<synchronous>, transform_indices = @transform_2, window_bounds = array<i64: 1, 128>}, {pipeline_mode = #tpu.pipeline_mode<synchronous>, transform_indices = @transform_3, window_bounds = array<i64: 3, 128>}, {pipeline_mode = #tpu.pipeline_mode<synchronous>, transform_indices = @transform_4, window_bounds = array<i64: 1, 128>}, {pipeline_mode = #tpu.pipeline_mode<synchronous>, transform_indices = @transform_5, window_bounds = array<i64: 128, 4>}, {pipeline_mode = #tpu.pipeline_mode<synchronous>, transform_indices = @transform_6, window_bounds = array<i64: 1, 4>}, {pipeline_mode = #tpu.pipeline_mode<synchronous>, transform_indices = @transform_7, window_bounds = array<i64: 4, 128>}, {pipeline_mode = #tpu.pipeline_mode<synchronous>, transform_indices = @transform_8, window_bounds = array<i64: 1, 128>}, {pipeline_mode = #tpu.pipeline_mode<synchronous>, transform_indices = @transform_9, window_bounds = array<i64: 3, 128>}, {pipeline_mode = #tpu.pipeline_mode<synchronous>, transform_indices = @transform_10, window_bounds = array<i64: 1, 128>}, {pipeline_mode = #tpu.pipeline_mode<synchronous>, transform_indices = @transform_11, window_bounds = array<i64: 128, 4>}, {pipeline_mode = #tpu.pipeline_mode<synchronous>, transform_indices = @transform_12, window_bounds = array<i64: 1, 4>}, {pipeline_mode = #tpu.pipeline_mode<synchronous>, transform_indices = @transform_13, window_bounds = array<i64: 4, 128>}, {pipeline_mode = #tpu.pipeline_mode<synchronous>, transform_indices = @transform_14, window_bounds = array<i64: 1, 128>}, {pipeline_mode = #tpu.pipeline_mode<synchronous>, transform_indices = @transform_15, window_bounds = array<i64: 3, 128>}, {pipeline_mode = #tpu.pipeline_mode<synchronous>, transform_indices = @transform_16, window_bounds = array<i64: 1, 128>}, {pipeline_mode = #tpu.pipeline_mode<synchronous>, transform_indices = @transform_17, window_bounds = array<i64: 128, 8>}, {pipeline_mode = #tpu.pipeline_mode<synchronous>, transform_indices = @transform_18, window_bounds = array<i64: 1, 8>}, {pipeline_mode = #tpu.pipeline_mode<synchronous>, transform_indices = @transform_19, window_bounds = array<i64: 1, 8>}, {pipeline_mode = #tpu.pipeline_mode<synchronous>, transform_indices = @transform_20, window_bounds = array<i64: 1, 8>}, {transform_indices = @transform_21, window_bounds = array<i64: 1, 8, 8>}]} {
    %c0 = arith.constant 0 : index
    %c0_0 = arith.constant 0 : index
    %c0_1 = arith.constant 0 : index
    %0 = vector.load %arg1[%c0, %c0_0, %c0_1] : memref<1x16x4xf32, #tpu.memory_space<vmem>>, vector<1x16x4xf32>
    %1 = vector.shape_cast %0 : vector<1x16x4xf32> to vector<16x4xf32>
    %c0_2 = arith.constant 0 : index
    %c0_3 = arith.constant 0 : index
    %2 = vector.load %arg2[%c0_2, %c0_3] : memref<4x128xf32, #tpu.memory_space<vmem>>, vector<4x128xf32>
    %cst = arith.constant dense<0.000000e+00> : vector<16x128xf32>
    %3 = tpu.matmul %1, %2, %cst {dimension_numbers = #tpu.dot_dimension_numbers<[1], [0], [0], [1], [0, 0, 1, 1], [], []>} : vector<16x4xf32>, vector<4x128xf32>, vector<16x128xf32> -> vector<16x128xf32>
    %c0_4 = arith.constant 0 : index
    %c0_5 = arith.constant 0 : index
    %4 = vector.load %arg3[%c0_4, %c0_5] : memref<1x128xf32, #tpu.memory_space<vmem>>, vector<1x128xf32>
    %5 = vector.broadcast %4 : vector<1x128xf32> to vector<16x128xf32>
    %6 = arith.addf %3, %5 : vector<16x128xf32>
    %cst_6 = arith.constant 0.000000e+00 : f32
    %cst_7 = arith.constant 6.000000e+00 : f32
    %7 = vector.broadcast %cst_6 : f32 to vector<16x128xf32>
    %8 = arith.maximumf %7, %6 : vector<16x128xf32>
    %9 = vector.broadcast %cst_7 : f32 to vector<16x128xf32>
    %10 = arith.minimumf %9, %8 : vector<16x128xf32>
    %11 = tpu.iota {dimensions = array<i32: 0>} : vector<16x1xi32>
    %c16_i32 = arith.constant 16 : i32
    %c0_i32 = arith.constant 0 : i32
    %12 = arith.cmpi eq, %c16_i32, %c0_i32 : i32
    %c1_i32 = arith.constant 1 : i32
    %13 = arith.select %12, %c1_i32, %c16_i32 : i32
    %14 = vector.broadcast %13 : i32 to vector<16x1xi32>
    %15 = arith.remsi %11, %14 : vector<16x1xi32>
    %c0_i32_8 = arith.constant 0 : i32
    %16 = vector.broadcast %c0_i32_8 : i32 to vector<16x1xi32>
    %17 = arith.cmpi ne, %15, %16 : vector<16x1xi32>
    %c0_i32_9 = arith.constant 0 : i32
    %18 = vector.broadcast %c0_i32_9 : i32 to vector<16x1xi32>
    %19 = arith.cmpi slt, %15, %18 : vector<16x1xi32>
    %c0_i32_10 = arith.constant 0 : i32
    %20 = arith.cmpi slt, %13, %c0_i32_10 : i32
    %21 = vector.broadcast %20 : i1 to vector<16x1xi1>
    %22 = vector.broadcast %21 : vector<16x1xi1> to vector<16x1xi1>
    %23 = arith.xori %19, %22 : vector<16x1xi1>
    %24 = arith.andi %23, %17 : vector<16x1xi1>
    %25 = vector.broadcast %13 : i32 to vector<16x1xi32>
    %26 = arith.addi %15, %25 : vector<16x1xi32>
    %27 = arith.select %24, %26, %15 : vector<16x1xi1>, vector<16x1xi32>
    %c0_i32_11 = arith.constant 0 : i32
    %28 = vector.broadcast %c0_i32_11 : i32 to vector<16x1xi32>
    %29 = arith.cmpi eq, %27, %28 : vector<16x1xi32>
    %c16_i32_12 = arith.constant 16 : i32
    %c0_i32_13 = arith.constant 0 : i32
    %30 = arith.cmpi eq, %c16_i32_12, %c0_i32_13 : i32
    %c1_i32_14 = arith.constant 1 : i32
    %31 = arith.select %30, %c1_i32_14, %c16_i32_12 : i32
    %32 = vector.broadcast %31 : i32 to vector<16x1xi32>
    %33 = arith.remsi %11, %32 : vector<16x1xi32>
    %c0_i32_15 = arith.constant 0 : i32
    %34 = vector.broadcast %c0_i32_15 : i32 to vector<16x1xi32>
    %35 = arith.cmpi ne, %33, %34 : vector<16x1xi32>
    %c0_i32_16 = arith.constant 0 : i32
    %36 = vector.broadcast %c0_i32_16 : i32 to vector<16x1xi32>
    %37 = arith.cmpi slt, %33, %36 : vector<16x1xi32>
    %c0_i32_17 = arith.constant 0 : i32
    %38 = arith.cmpi slt, %31, %c0_i32_17 : i32
    %39 = vector.broadcast %38 : i1 to vector<16x1xi1>
    %40 = vector.broadcast %39 : vector<16x1xi1> to vector<16x1xi1>
    %41 = arith.xori %37, %40 : vector<16x1xi1>
    %42 = arith.andi %41, %35 : vector<16x1xi1>
    %43 = vector.broadcast %31 : i32 to vector<16x1xi32>
    %44 = arith.addi %33, %43 : vector<16x1xi32>
    %45 = arith.select %42, %44, %33 : vector<16x1xi1>, vector<16x1xi32>
    %c15_i32 = arith.constant 15 : i32
    %46 = vector.broadcast %c15_i32 : i32 to vector<16x1xi32>
    %47 = arith.cmpi eq, %45, %46 : vector<16x1xi32>
    %c0_18 = arith.constant 0 : index
    %c0_19 = arith.constant 0 : index
    %48 = vector.load %arg4[%c0_18, %c0_19] : memref<3x128xf32, #tpu.memory_space<vmem>>, vector<3x128xf32>
    %c1_i32_20 = arith.constant 1 : i32
    %49 = tpu.dynamic_rotate %10 by %c1_i32_20 dim 0 : vector<16x128xf32>, i32 -> vector<16x128xf32>
    %cst_21 = arith.constant 0.000000e+00 : f32
    %50 = vector.shape_cast %29 : vector<16x1xi1> to vector<16x1xi1>
    %51 = vector.broadcast %50 : vector<16x1xi1> to vector<16x128xi1>
    %52 = vector.broadcast %cst_21 : f32 to vector<16x128xf32>
    %53 = arith.select %51, %52, %49 : vector<16x128xi1>, vector<16x128xf32>
    %c15_i32_22 = arith.constant 15 : i32
    %54 = tpu.dynamic_rotate %10 by %c15_i32_22 dim 0 : vector<16x128xf32>, i32 -> vector<16x128xf32>
    %cst_23 = arith.constant 0.000000e+00 : f32
    %55 = vector.shape_cast %47 : vector<16x1xi1> to vector<16x1xi1>
    %56 = vector.broadcast %55 : vector<16x1xi1> to vector<16x128xi1>
    %57 = vector.broadcast %cst_23 : f32 to vector<16x128xf32>
    %58 = arith.select %56, %57, %54 : vector<16x128xi1>, vector<16x128xf32>
    %59 = vector.extract_strided_slice %48 {offsets = [0, 0], sizes = [1, 128], strides = [1, 1]} : vector<3x128xf32> to vector<1x128xf32>
    %60 = vector.broadcast %59 : vector<1x128xf32> to vector<16x128xf32>
    %61 = arith.mulf %53, %60 : vector<16x128xf32>
    %62 = vector.extract_strided_slice %48 {offsets = [1, 0], sizes = [1, 128], strides = [1, 1]} : vector<3x128xf32> to vector<1x128xf32>
    %63 = vector.broadcast %62 : vector<1x128xf32> to vector<16x128xf32>
    %64 = arith.mulf %10, %63 : vector<16x128xf32>
    %65 = arith.addf %61, %64 : vector<16x128xf32>
    %66 = vector.extract_strided_slice %48 {offsets = [2, 0], sizes = [1, 128], strides = [1, 1]} : vector<3x128xf32> to vector<1x128xf32>
    %67 = vector.broadcast %66 : vector<1x128xf32> to vector<16x128xf32>
    %68 = arith.mulf %58, %67 : vector<16x128xf32>
    %69 = arith.addf %65, %68 : vector<16x128xf32>
    %c0_24 = arith.constant 0 : index
    %c0_25 = arith.constant 0 : index
    %70 = vector.load %arg5[%c0_24, %c0_25] : memref<1x128xf32, #tpu.memory_space<vmem>>, vector<1x128xf32>
    %71 = vector.broadcast %70 : vector<1x128xf32> to vector<16x128xf32>
    %72 = arith.addf %69, %71 : vector<16x128xf32>
    %cst_26 = arith.constant 0.000000e+00 : f32
    %cst_27 = arith.constant 6.000000e+00 : f32
    %73 = vector.broadcast %cst_26 : f32 to vector<16x128xf32>
    %74 = arith.maximumf %73, %72 : vector<16x128xf32>
    %75 = vector.broadcast %cst_27 : f32 to vector<16x128xf32>
    %76 = arith.minimumf %75, %74 : vector<16x128xf32>
    %c0_28 = arith.constant 0 : index
    %c0_29 = arith.constant 0 : index
    %77 = vector.load %arg6[%c0_28, %c0_29] : memref<128x4xf32, #tpu.memory_space<vmem>>, vector<128x4xf32>
    %cst_30 = arith.constant dense<0.000000e+00> : vector<16x4xf32>
    %78 = tpu.matmul %76, %77, %cst_30 {dimension_numbers = #tpu.dot_dimension_numbers<[1], [0], [0], [1], [0, 0, 1, 1], [], []>} : vector<16x128xf32>, vector<128x4xf32>, vector<16x4xf32> -> vector<16x4xf32>
    %c0_31 = arith.constant 0 : index
    %c0_32 = arith.constant 0 : index
    %79 = vector.load %arg7[%c0_31, %c0_32] : memref<1x4xf32, #tpu.memory_space<vmem>>, vector<1x4xf32>
    %80 = vector.broadcast %79 : vector<1x4xf32> to vector<16x4xf32>
    %81 = arith.addf %78, %80 : vector<16x4xf32>
    %82 = arith.addf %1, %81 : vector<16x4xf32>
    %c0_33 = arith.constant 0 : index
    %c0_34 = arith.constant 0 : index
    %83 = vector.load %arg8[%c0_33, %c0_34] : memref<4x128xf32, #tpu.memory_space<vmem>>, vector<4x128xf32>
    %cst_35 = arith.constant dense<0.000000e+00> : vector<16x128xf32>
    %84 = tpu.matmul %82, %83, %cst_35 {dimension_numbers = #tpu.dot_dimension_numbers<[1], [0], [0], [1], [0, 0, 1, 1], [], []>} : vector<16x4xf32>, vector<4x128xf32>, vector<16x128xf32> -> vector<16x128xf32>
    %c0_36 = arith.constant 0 : index
    %c0_37 = arith.constant 0 : index
    %85 = vector.load %arg9[%c0_36, %c0_37] : memref<1x128xf32, #tpu.memory_space<vmem>>, vector<1x128xf32>
    %86 = vector.broadcast %85 : vector<1x128xf32> to vector<16x128xf32>
    %87 = arith.addf %84, %86 : vector<16x128xf32>
    %cst_38 = arith.constant 0.000000e+00 : f32
    %cst_39 = arith.constant 6.000000e+00 : f32
    %88 = vector.broadcast %cst_38 : f32 to vector<16x128xf32>
    %89 = arith.maximumf %88, %87 : vector<16x128xf32>
    %90 = vector.broadcast %cst_39 : f32 to vector<16x128xf32>
    %91 = arith.minimumf %90, %89 : vector<16x128xf32>
    %c0_40 = arith.constant 0 : index
    %c0_41 = arith.constant 0 : index
    %92 = vector.load %arg10[%c0_40, %c0_41] : memref<3x128xf32, #tpu.memory_space<vmem>>, vector<3x128xf32>
    %c1_i32_42 = arith.constant 1 : i32
    %93 = tpu.dynamic_rotate %91 by %c1_i32_42 dim 0 : vector<16x128xf32>, i32 -> vector<16x128xf32>
    %cst_43 = arith.constant 0.000000e+00 : f32
    %94 = vector.shape_cast %29 : vector<16x1xi1> to vector<16x1xi1>
    %95 = vector.broadcast %94 : vector<16x1xi1> to vector<16x128xi1>
    %96 = vector.broadcast %cst_43 : f32 to vector<16x128xf32>
    %97 = arith.select %95, %96, %93 : vector<16x128xi1>, vector<16x128xf32>
    %c15_i32_44 = arith.constant 15 : i32
    %98 = tpu.dynamic_rotate %91 by %c15_i32_44 dim 0 : vector<16x128xf32>, i32 -> vector<16x128xf32>
    %cst_45 = arith.constant 0.000000e+00 : f32
    %99 = vector.shape_cast %47 : vector<16x1xi1> to vector<16x1xi1>
    %100 = vector.broadcast %99 : vector<16x1xi1> to vector<16x128xi1>
    %101 = vector.broadcast %cst_45 : f32 to vector<16x128xf32>
    %102 = arith.select %100, %101, %98 : vector<16x128xi1>, vector<16x128xf32>
    %103 = vector.extract_strided_slice %92 {offsets = [0, 0], sizes = [1, 128], strides = [1, 1]} : vector<3x128xf32> to vector<1x128xf32>
    %104 = vector.broadcast %103 : vector<1x128xf32> to vector<16x128xf32>
    %105 = arith.mulf %97, %104 : vector<16x128xf32>
    %106 = vector.extract_strided_slice %92 {offsets = [1, 0], sizes = [1, 128], strides = [1, 1]} : vector<3x128xf32> to vector<1x128xf32>
    %107 = vector.broadcast %106 : vector<1x128xf32> to vector<16x128xf32>
    %108 = arith.mulf %91, %107 : vector<16x128xf32>
    %109 = arith.addf %105, %108 : vector<16x128xf32>
    %110 = vector.extract_strided_slice %92 {offsets = [2, 0], sizes = [1, 128], strides = [1, 1]} : vector<3x128xf32> to vector<1x128xf32>
    %111 = vector.broadcast %110 : vector<1x128xf32> to vector<16x128xf32>
    %112 = arith.mulf %102, %111 : vector<16x128xf32>
    %113 = arith.addf %109, %112 : vector<16x128xf32>
    %c0_46 = arith.constant 0 : index
    %c0_47 = arith.constant 0 : index
    %114 = vector.load %arg11[%c0_46, %c0_47] : memref<1x128xf32, #tpu.memory_space<vmem>>, vector<1x128xf32>
    %115 = vector.broadcast %114 : vector<1x128xf32> to vector<16x128xf32>
    %116 = arith.addf %113, %115 : vector<16x128xf32>
    %cst_48 = arith.constant 0.000000e+00 : f32
    %cst_49 = arith.constant 6.000000e+00 : f32
    %117 = vector.broadcast %cst_48 : f32 to vector<16x128xf32>
    %118 = arith.maximumf %117, %116 : vector<16x128xf32>
    %119 = vector.broadcast %cst_49 : f32 to vector<16x128xf32>
    %120 = arith.minimumf %119, %118 : vector<16x128xf32>
    %c0_50 = arith.constant 0 : index
    %c0_51 = arith.constant 0 : index
    %121 = vector.load %arg12[%c0_50, %c0_51] : memref<128x4xf32, #tpu.memory_space<vmem>>, vector<128x4xf32>
    %cst_52 = arith.constant dense<0.000000e+00> : vector<16x4xf32>
    %122 = tpu.matmul %120, %121, %cst_52 {dimension_numbers = #tpu.dot_dimension_numbers<[1], [0], [0], [1], [0, 0, 1, 1], [], []>} : vector<16x128xf32>, vector<128x4xf32>, vector<16x4xf32> -> vector<16x4xf32>
    %c0_53 = arith.constant 0 : index
    %c0_54 = arith.constant 0 : index
    %123 = vector.load %arg13[%c0_53, %c0_54] : memref<1x4xf32, #tpu.memory_space<vmem>>, vector<1x4xf32>
    %124 = vector.broadcast %123 : vector<1x4xf32> to vector<16x4xf32>
    %125 = arith.addf %122, %124 : vector<16x4xf32>
    %126 = arith.addf %82, %125 : vector<16x4xf32>
    %c0_55 = arith.constant 0 : index
    %c0_56 = arith.constant 0 : index
    %127 = vector.load %arg14[%c0_55, %c0_56] : memref<4x128xf32, #tpu.memory_space<vmem>>, vector<4x128xf32>
    %cst_57 = arith.constant dense<0.000000e+00> : vector<16x128xf32>
    %128 = tpu.matmul %126, %127, %cst_57 {dimension_numbers = #tpu.dot_dimension_numbers<[1], [0], [0], [1], [0, 0, 1, 1], [], []>} : vector<16x4xf32>, vector<4x128xf32>, vector<16x128xf32> -> vector<16x128xf32>
    %c0_58 = arith.constant 0 : index
    %c0_59 = arith.constant 0 : index
    %129 = vector.load %arg15[%c0_58, %c0_59] : memref<1x128xf32, #tpu.memory_space<vmem>>, vector<1x128xf32>
    %130 = vector.broadcast %129 : vector<1x128xf32> to vector<16x128xf32>
    %131 = arith.addf %128, %130 : vector<16x128xf32>
    %cst_60 = arith.constant 0.000000e+00 : f32
    %cst_61 = arith.constant 6.000000e+00 : f32
    %132 = vector.broadcast %cst_60 : f32 to vector<16x128xf32>
    %133 = arith.maximumf %132, %131 : vector<16x128xf32>
    %134 = vector.broadcast %cst_61 : f32 to vector<16x128xf32>
    %135 = arith.minimumf %134, %133 : vector<16x128xf32>
    %c0_62 = arith.constant 0 : index
    %c0_63 = arith.constant 0 : index
    %136 = vector.load %arg16[%c0_62, %c0_63] : memref<3x128xf32, #tpu.memory_space<vmem>>, vector<3x128xf32>
    %c1_i32_64 = arith.constant 1 : i32
    %137 = tpu.dynamic_rotate %135 by %c1_i32_64 dim 0 : vector<16x128xf32>, i32 -> vector<16x128xf32>
    %cst_65 = arith.constant 0.000000e+00 : f32
    %138 = vector.shape_cast %29 : vector<16x1xi1> to vector<16x1xi1>
    %139 = vector.broadcast %138 : vector<16x1xi1> to vector<16x128xi1>
    %140 = vector.broadcast %cst_65 : f32 to vector<16x128xf32>
    %141 = arith.select %139, %140, %137 : vector<16x128xi1>, vector<16x128xf32>
    %c15_i32_66 = arith.constant 15 : i32
    %142 = tpu.dynamic_rotate %135 by %c15_i32_66 dim 0 : vector<16x128xf32>, i32 -> vector<16x128xf32>
    %cst_67 = arith.constant 0.000000e+00 : f32
    %143 = vector.shape_cast %47 : vector<16x1xi1> to vector<16x1xi1>
    %144 = vector.broadcast %143 : vector<16x1xi1> to vector<16x128xi1>
    %145 = vector.broadcast %cst_67 : f32 to vector<16x128xf32>
    %146 = arith.select %144, %145, %142 : vector<16x128xi1>, vector<16x128xf32>
    %147 = vector.extract_strided_slice %136 {offsets = [0, 0], sizes = [1, 128], strides = [1, 1]} : vector<3x128xf32> to vector<1x128xf32>
    %148 = vector.broadcast %147 : vector<1x128xf32> to vector<16x128xf32>
    %149 = arith.mulf %141, %148 : vector<16x128xf32>
    %150 = vector.extract_strided_slice %136 {offsets = [1, 0], sizes = [1, 128], strides = [1, 1]} : vector<3x128xf32> to vector<1x128xf32>
    %151 = vector.broadcast %150 : vector<1x128xf32> to vector<16x128xf32>
    %152 = arith.mulf %135, %151 : vector<16x128xf32>
    %153 = arith.addf %149, %152 : vector<16x128xf32>
    %154 = vector.extract_strided_slice %136 {offsets = [2, 0], sizes = [1, 128], strides = [1, 1]} : vector<3x128xf32> to vector<1x128xf32>
    %155 = vector.broadcast %154 : vector<1x128xf32> to vector<16x128xf32>
    %156 = arith.mulf %146, %155 : vector<16x128xf32>
    %157 = arith.addf %153, %156 : vector<16x128xf32>
    %158 = vector.shape_cast %157 : vector<16x128xf32> to vector<8x256xf32>
    %159 = vector.extract_strided_slice %158 {offsets = [0, 0], sizes = [8, 128], strides = [1, 1]} : vector<8x256xf32> to vector<8x128xf32>
    %c0_68 = arith.constant 0 : index
    %c0_69 = arith.constant 0 : index
    %160 = vector.load %arg17[%c0_68, %c0_69] : memref<1x128xf32, #tpu.memory_space<vmem>>, vector<1x128xf32>
    %161 = vector.broadcast %160 : vector<1x128xf32> to vector<8x128xf32>
    %162 = arith.addf %159, %161 : vector<8x128xf32>
    %cst_70 = arith.constant 0.000000e+00 : f32
    %cst_71 = arith.constant 6.000000e+00 : f32
    %163 = vector.broadcast %cst_70 : f32 to vector<8x128xf32>
    %164 = arith.maximumf %163, %162 : vector<8x128xf32>
    %165 = vector.broadcast %cst_71 : f32 to vector<8x128xf32>
    %166 = arith.minimumf %165, %164 : vector<8x128xf32>
    %c0_72 = arith.constant 0 : index
    %c0_73 = arith.constant 0 : index
    %167 = vector.load %arg18[%c0_72, %c0_73] : memref<128x8xf32, #tpu.memory_space<vmem>>, vector<128x8xf32>
    %cst_74 = arith.constant dense<0.000000e+00> : vector<8x8xf32>
    %168 = tpu.matmul %166, %167, %cst_74 {dimension_numbers = #tpu.dot_dimension_numbers<[1], [0], [0], [1], [0, 0, 1, 1], [], []>} : vector<8x128xf32>, vector<128x8xf32>, vector<8x8xf32> -> vector<8x8xf32>
    %c0_75 = arith.constant 0 : index
    %c0_76 = arith.constant 0 : index
    %169 = vector.load %arg19[%c0_75, %c0_76] : memref<1x8xf32, #tpu.memory_space<vmem>>, vector<1x8xf32>
    %170 = vector.broadcast %169 : vector<1x8xf32> to vector<8x8xf32>
    %171 = arith.addf %168, %170 : vector<8x8xf32>
    %c0_77 = arith.constant 0 : index
    %c0_78 = arith.constant 0 : index
    %172 = vector.load %arg20[%c0_77, %c0_78] : memref<1x8xf32, #tpu.memory_space<vmem>>, vector<1x8xf32>
    %173 = vector.broadcast %172 : vector<1x8xf32> to vector<8x8xf32>
    %174 = arith.mulf %171, %173 : vector<8x8xf32>
    %c0_79 = arith.constant 0 : index
    %c0_80 = arith.constant 0 : index
    %175 = vector.load %arg21[%c0_79, %c0_80] : memref<1x8xf32, #tpu.memory_space<vmem>>, vector<1x8xf32>
    %176 = vector.broadcast %175 : vector<1x8xf32> to vector<8x8xf32>
    %177 = arith.addf %174, %176 : vector<8x8xf32>
    %178 = vector.shape_cast %177 : vector<8x8xf32> to vector<1x8x8xf32>
    %c0_81 = arith.constant 0 : index
    %c0_82 = arith.constant 0 : index
    %c0_83 = arith.constant 0 : index
    %179 = vector.load %arg22[%c0_81, %c0_82, %c0_83] : memref<1x8x8xf32, #tpu.memory_space<vmem>>, vector<1x8x8xf32>
    tpu.vector_store %arg22[%c0_81, %c0_82, %c0_83], %178 {strides = array<i32>} : memref<1x8x8xf32, #tpu.memory_space<vmem>>, vector<1x8x8xf32>,
    return
  }
  func.func @transform_0(%arg0: i32) -> (i32, i32, i32) {
    %c0_i32 = arith.constant 0 : i32
    %c0_i32_0 = arith.constant 0 : i32
    %c0_i32_1 = arith.constant 0 : i32
    return %arg0, %c0_i32, %c0_i32_0 : i32, i32, i32
  }
  func.func @transform_1(%arg0: i32) -> (i32, i32) {
    %c0_i32 = arith.constant 0 : i32
    %c0_i32_0 = arith.constant 0 : i32
    %c0_i32_1 = arith.constant 0 : i32
    return %c0_i32, %c0_i32_0 : i32, i32
  }
  func.func @transform_2(%arg0: i32) -> (i32, i32) {
    %c0_i32 = arith.constant 0 : i32
    %c0_i32_0 = arith.constant 0 : i32
    %c0_i32_1 = arith.constant 0 : i32
    return %c0_i32, %c0_i32_0 : i32, i32
  }
  func.func @transform_3(%arg0: i32) -> (i32, i32) {
    %c0_i32 = arith.constant 0 : i32
    %c0_i32_0 = arith.constant 0 : i32
    %c0_i32_1 = arith.constant 0 : i32
    return %c0_i32, %c0_i32_0 : i32, i32
  }
  func.func @transform_4(%arg0: i32) -> (i32, i32) {
    %c0_i32 = arith.constant 0 : i32
    %c0_i32_0 = arith.constant 0 : i32
    %c0_i32_1 = arith.constant 0 : i32
    return %c0_i32, %c0_i32_0 : i32, i32
  }
  func.func @transform_5(%arg0: i32) -> (i32, i32) {
    %c0_i32 = arith.constant 0 : i32
    %c0_i32_0 = arith.constant 0 : i32
    %c0_i32_1 = arith.constant 0 : i32
    return %c0_i32, %c0_i32_0 : i32, i32
  }
  func.func @transform_6(%arg0: i32) -> (i32, i32) {
    %c0_i32 = arith.constant 0 : i32
    %c0_i32_0 = arith.constant 0 : i32
    %c0_i32_1 = arith.constant 0 : i32
    return %c0_i32, %c0_i32_0 : i32, i32
  }
  func.func @transform_7(%arg0: i32) -> (i32, i32) {
    %c0_i32 = arith.constant 0 : i32
    %c0_i32_0 = arith.constant 0 : i32
    %c0_i32_1 = arith.constant 0 : i32
    return %c0_i32, %c0_i32_0 : i32, i32
  }
  func.func @transform_8(%arg0: i32) -> (i32, i32) {
    %c0_i32 = arith.constant 0 : i32
    %c0_i32_0 = arith.constant 0 : i32
    %c0_i32_1 = arith.constant 0 : i32
    return %c0_i32, %c0_i32_0 : i32, i32
  }
  func.func @transform_9(%arg0: i32) -> (i32, i32) {
    %c0_i32 = arith.constant 0 : i32
    %c0_i32_0 = arith.constant 0 : i32
    %c0_i32_1 = arith.constant 0 : i32
    return %c0_i32, %c0_i32_0 : i32, i32
  }
  func.func @transform_10(%arg0: i32) -> (i32, i32) {
    %c0_i32 = arith.constant 0 : i32
    %c0_i32_0 = arith.constant 0 : i32
    %c0_i32_1 = arith.constant 0 : i32
    return %c0_i32, %c0_i32_0 : i32, i32
  }
  func.func @transform_11(%arg0: i32) -> (i32, i32) {
    %c0_i32 = arith.constant 0 : i32
    %c0_i32_0 = arith.constant 0 : i32
    %c0_i32_1 = arith.constant 0 : i32
    return %c0_i32, %c0_i32_0 : i32, i32
  }
  func.func @transform_12(%arg0: i32) -> (i32, i32) {
    %c0_i32 = arith.constant 0 : i32
    %c0_i32_0 = arith.constant 0 : i32
    %c0_i32_1 = arith.constant 0 : i32
    return %c0_i32, %c0_i32_0 : i32, i32
  }
  func.func @transform_13(%arg0: i32) -> (i32, i32) {
    %c0_i32 = arith.constant 0 : i32
    %c0_i32_0 = arith.constant 0 : i32
    %c0_i32_1 = arith.constant 0 : i32
    return %c0_i32, %c0_i32_0 : i32, i32
  }
  func.func @transform_14(%arg0: i32) -> (i32, i32) {
    %c0_i32 = arith.constant 0 : i32
    %c0_i32_0 = arith.constant 0 : i32
    %c0_i32_1 = arith.constant 0 : i32
    return %c0_i32, %c0_i32_0 : i32, i32
  }
  func.func @transform_15(%arg0: i32) -> (i32, i32) {
    %c0_i32 = arith.constant 0 : i32
    %c0_i32_0 = arith.constant 0 : i32
    %c0_i32_1 = arith.constant 0 : i32
    return %c0_i32, %c0_i32_0 : i32, i32
  }
  func.func @transform_16(%arg0: i32) -> (i32, i32) {
    %c0_i32 = arith.constant 0 : i32
    %c0_i32_0 = arith.constant 0 : i32
    %c0_i32_1 = arith.constant 0 : i32
    return %c0_i32, %c0_i32_0 : i32, i32
  }
  func.func @transform_17(%arg0: i32) -> (i32, i32) {
    %c0_i32 = arith.constant 0 : i32
    %c0_i32_0 = arith.constant 0 : i32
    %c0_i32_1 = arith.constant 0 : i32
    return %c0_i32, %c0_i32_0 : i32, i32
  }
  func.func @transform_18(%arg0: i32) -> (i32, i32) {
    %c0_i32 = arith.constant 0 : i32
    %c0_i32_0 = arith.constant 0 : i32
    %c0_i32_1 = arith.constant 0 : i32
    return %c0_i32, %c0_i32_0 : i32, i32
  }
  func.func @transform_19(%arg0: i32) -> (i32, i32) {
    %c0_i32 = arith.constant 0 : i32
    %c0_i32_0 = arith.constant 0 : i32
    %c0_i32_1 = arith.constant 0 : i32
    return %c0_i32, %c0_i32_0 : i32, i32
  }
  func.func @transform_20(%arg0: i32) -> (i32, i32) {
    %c0_i32 = arith.constant 0 : i32
    %c0_i32_0 = arith.constant 0 : i32
    %c0_i32_1 = arith.constant 0 : i32
    return %c0_i32, %c0_i32_0 : i32, i32
  }
  func.func @transform_21(%arg0: i32) -> (i32, i32, i32) {
    %c0_i32 = arith.constant 0 : i32
    %c0_i32_0 = arith.constant 0 : i32
    %c0_i32_1 = arith.constant 0 : i32
    return %arg0, %c0_i32, %c0_i32_0 : i32, i32, i32
  }
}

</mosaic_0001>

<bundles_post_ra>
// kernel: tpu_custom_call.1
= control target key start
LH: loop header
LB: loop body
LE: loop exit
PB: predicated region body
PF: predicated region fallthrough
CT: control target
= control target key end

     0   :  { %s2452_s0 = inlined_call_operand.vmem [shape: f32[2,16,4], index: 0, kind: input, shape index: {}]   ;;  %s2453_s1 = inlined_call_operand.vmem [shape: f32[4,128], index: 1, kind: input, shape index: {}]   ;;  %s2454_s2 = inlined_call_operand.vmem [shape: f32[1,128], index: 2, kind: input, shape index: {}]   ;;  %s2455_s3 = inlined_call_operand.vmem [shape: f32[3,128], index: 3, kind: input, shape index: {}]   ;;  %s2456_s4 = inlined_call_operand.vmem [shape: f32[1,128], index: 4, kind: input, shape index: {}]   ;;  %s2457_s5 = inlined_call_operand.vmem [shape: f32[128,4], index: 5, kind: input, shape index: {}]   ;;  %s2458_s6 = inlined_call_operand.vmem [shape: f32[1,4], index: 6, kind: input, shape index: {}]   ;;  %s2459_s7 = inlined_call_operand.vmem [shape: f32[4,128], index: 7, kind: input, shape index: {}]   ;;  %s2460_s8 = inlined_call_operand.vmem [shape: f32[1,128], index: 8, kind: input, shape index: {}]   ;;  %s2461_s9 = inlined_call_operand.vmem [shape: f32[3,128], index: 9, kind: input, shape index: {}]   ;;  %s2462_s10 = inlined_call_operand.vmem [shape: f32[1,128], index: 10, kind: input, shape index: {}]   ;;  %s2463_s11 = inlined_call_operand.vmem [shape: f32[128,4], index: 11, kind: input, shape index: {}]   ;;  %s2464_s12 = inlined_call_operand.vmem [shape: f32[1,4], index: 12, kind: input, shape index: {}]   ;;  %s2465_s13 = inlined_call_operand.vmem [shape: f32[4,128], index: 13, kind: input, shape index: {}]   ;;  %s2466_s14 = inlined_call_operand.vmem [shape: f32[1,128], index: 14, kind: input, shape index: {}]   ;;  %s2467_s15 = inlined_call_operand.vmem [shape: f32[3,128], index: 15, kind: input, shape index: {}]   ;;  %s2468_s16 = inlined_call_operand.vmem [shape: f32[1,128], index: 16, kind: input, shape index: {}]   ;;  %s2469_s17 = inlined_call_operand.vmem [shape: f32[128,8], index: 17, kind: input, shape index: {}]   ;;  %s2470_s18 = inlined_call_operand.vmem [shape: f32[1,8], index: 18, kind: input, shape index: {}]   ;;  %s2471_s19 = inlined_call_operand.vmem [shape: f32[1,8], index: 19, kind: input, shape index: {}]   ;;  %s2472_s20 = inlined_call_operand.vmem [shape: f32[1,8], index: 20, kind: input, shape index: {}]   ;;  %s2473_s21 = inlined_call_operand.hbm [shape: f32[2,8,8], index: 21, kind: output, shape index: {}]  }
   0x1   :  { %2481 = sst [smem:[#allocation10_spill]] %s2452_s0 }
   0x2   :  { %2482 = sst [smem:[#allocation11_spill]] %s2453_s1 }
   0x3   :  { %2483 = sst [smem:[#allocation12_spill]] %s2454_s2 }
   0x4   :  { %2484 = sst [smem:[#allocation13_spill]] %s2455_s3 }
   0x5   :  { %2485 = sst [smem:[#allocation14_spill]] %s2456_s4 }
   0x6   :  { %2486 = sst [smem:[#allocation15_spill]] %s2457_s5 }
   0x7   :  { %2487 = sst [smem:[#allocation16_spill]] %s2458_s6 }
   0x8   :  { %26 = vsyncpa [#allocation3], 0 }
   0x9   :  { %28 = vsyncpa [#allocation3 + $0x1], 0  ;;  %s2060_s2 = smov 0   ;;  %s2062_s25 = smov 0  }
   0xa   :  { %s2064_s26 = smov 0   ;;  %s2066_s27 = smov 0  }
   0xb LB: > { %2488 = sst [smem:[#allocation5_spill]] %s1931_s2  ;;  %s2081_s3 = sadd.s32 4294967295, %s1943_s27   ;;  %s1943_s27 = sphi %s2066_s27, %s2508_s27   ;;  %s1939_s26 = sphi %s2064_s26, %s2510_s26   ;;  %s1935_s25 = sphi %s2062_s25, %s2512_s25   ;;  %s1931_s2 = sphi %s2060_s2, %s2511_s2  }
   0xc   : > { %2489 = sst [smem:[#allocation6_spill]] %s1939_s26  ;;  %s1536_s28 = sadd.s32 4294967294, %s1943_s27  }
   0xd   : > { %s2085_s29 = sadd.s32 1, %s1943_s27   ;;  %s487_s0 = sadd.s32 1, %s1939_s26 }
   0xe   : > { %2490 = sst [smem:[#allocation7_spill]] %s2085_s29  ;;  %s484_s4 = ssub.s32 %s1943_s27, %s2085_s29 }
   0xf   : > { %p497_p0 = scmp.ne.s32.totalorder %s1939_s26, %s1935_s25  ;;  %p485_p1 = scmp.eq.s32.totalorder %s484_s4, 0 }
  0x10   : > { %p498_p2 = scmp.eq.s32.totalorder %s2081_s3, 1  ;;  %p503_p3 = scmp.ne.s32.totalorder %s1935_s25, %s1931_s2 }
  0x11   : > { %p504_p4 = scmp.eq.s32.totalorder %s1536_s28, 1  ;;  %p1539_p7 = scmp.ge.s32.totalorder %s1943_s27, 1 }
  0x12   : > { %s2096_s30 = scalar_select %p485_p1, %s1939_s26, %s487_s0  }
  0x13   : > { %p2098_p5 = por %p498_p2, %p497_p0  ;;  %p2102_p6 = por %p504_p4, %p503_p3 }
  0x14   : > { %2491 = sst [smem:[#allocation8_spill]] %s2096_s30  ;;  %p590_p8 = scmp.lt.s32.totalorder %s1943_s27, 3 }
  0x15   : > { %s2493_s22 = scalar_select %p2102_p6, 1, 0 }
  0x16   : > { %p591_p9 = pnand %p1539_p7, %p590_p8 }
  0x17   : > { %2494 = sst [smem:[#allocation9_spill]] %s2493_s22  ;;  %s2495_s24 = sld [smem:[#allocation11_spill]] (!%p591_p9)  ;;  %vm672_vm0 = vcmask (!%p591_p9), 1043456   ;;  %vm665_vm1 = vcmask (!%p591_p9), 31744   ;;  %v755_v27 = vlaneseq (!%p591_p9)  ;;  %vm1946_vm6 = vmmov (!%p591_p9), 0  }
  0x18   : > { %594 = sbr.rel (%p591_p9) target bundleno = 1416 (0x588), region = 104  ;;  %p650_p10 = scmp.lt.s32.totalorder (!%p591_p9), %s2081_s3, 1  ;;  %vm1461_vm7 = vcmask (!%p591_p9), 64512  }
  0x19   : > { %s2496_s4 = sld [smem:[#allocation15_spill]] (!%p591_p9)  ;;  %s2497_s26 = sld [smem:[#allocation10_spill]] (!%p591_p9)  ;;  %v2177_v29 = vshrl.u32 (!%p591_p9), %v755_v27, 7 }
  0x1a   : > { %s2504_s23 = sld [smem:[#allocation14_spill]] (!%p591_p9)  ;;  %s2505_s6 = sld [smem:[#allocation16_spill]] (!%p591_p9) }
  0x1b   : > { %v757_v31 = vadd.s32 (!%p591_p9), 8, %v2177_v29  ;;  %v2181_v34 = vsub.s32 (!%p591_p9), 1, %v2177_v29  ;;  %v2187_v38 = vsub.s32 (!%p591_p9), 0, %v2177_v29  ;;  %v2190_v39 = vsub.s32 (!%p591_p9), 2, %v2177_v29  ;;  %s647_s0 = sand.u32 (!%p591_p9), 1, %s1935_s25  }
  0x1c   : > { %v762_v41 = vand.u32 (!%p591_p9), 15, %v2177_v29  ;;  %vm789_vm2 = vcmp.lt.s32.totalorder (!%p591_p9), %v2177_v29, 1  ;;  %vm800_vm3 = vcmp.lt.s32.totalorder (!%p591_p9), %v2177_v29, 7  ;;  %s1464_s22 = scalar_lea.sflag (!%p591_p9), [#allocation3], %s647_s0 }
  0x1d   : > { %v657_v0 = vld [vmem:[%s2495_s24] sm:$0xf] (!%p591_p9)  ;;  %v769_v42 = vand.u32 (!%p591_p9), 15, %v757_v31  ;;  %v1094_v31 = vld [vmem:[%s2463_s11 + $0x30] sm:$0xff] (!%p591_p9) }
  0x1e   : > { %1630 = vmatprep.subr.msk.mxu0 (!%p591_p9), %vm672_vm0, %v657_v0  ;;  %vm2198_vm4 = vcmp.eq.s32.totalorder (!%p591_p9), %v762_v41, 0  ;;  %v1099_v41 = vld [vmem:[%s2463_s11 + $0x58] sm:$0xff] (!%p591_p9) }
  0x1f   : > { %v844_v1 = vld [vmem:[%s2496_s4] sm:$0xff]  ;;  %v845_v2 = vld [vmem:[%s2496_s4 + $0x8] sm:$0xff]  ;;  %v846_v3 = vld [vmem:[%s2496_s4 + $0x10] sm:$0xff]  ;;  %1631 = vmatpush3.msk.msra.mxu0 %vm672_vm0, %v657_v0  ;;  %s651_s24 = scalar_select %p650_p10, %s2081_s3, 1  ;;  %vm2202_vm5 = vcmp.eq.s32.totalorder %v769_v42, 15 }
  0x20   : > { %v847_v4 = vld [vmem:[%s2496_s4 + $0x18] sm:$0xff]  ;;  %v1750_v5 = vpack.c.bf16 %v845_v2, %v844_v1  ;;  %v848_v9 = vld [vmem:[%s2496_s4 + $0x20] sm:$0xff]  ;;  %v849_v10 = vld [vmem:[%s2496_s4 + $0x28] sm:$0xff] }
  0x21   : > { %v1754_v6 = vpack.c.bf16 %v847_v4, %v846_v3  ;;  %s1567_s28 = sshll.u32 %s651_s24, 4  ;;  %v1758_v11 = vpack.c.bf16 %v849_v10, %v848_v9  ;;  %v850_v12 = vld [vmem:[%s2496_s4 + $0x30] sm:$0xff]  ;;  %v851_v13 = vld [vmem:[%s2496_s4 + $0x38] sm:$0xff]  ;;  %v852_v15 = vld [vmem:[%s2496_s4 + $0x40] sm:$0xff]  ;;  %s1564_s24 = sshll.u32 %s2081_s3, 7 }
  0x22   : > { %1751 = vmatprep.subr.bf16.mxu1 %v1750_v5  ;;  %s654_s30 = scalar_lea.vmem %s2497_s26, %s1567_s28  ;;  %v1762_v14 = vpack.c.bf16 %v851_v13, %v850_v12  ;;  %v853_v16 = vld [vmem:[%s2496_s4 + $0x48] sm:$0xff]  ;;  %v854_v18 = vld [vmem:[%s2496_s4 + $0x50] sm:$0xff]  ;;  %v855_v19 = vld [vmem:[%s2496_s4 + $0x58] sm:$0xff]  ;;  %s2498_s28 = sld [smem:[#allocation12_spill]] }
  0x23   : > { %1753 = vmatpush3.bf16.msra.mxu1 %v1750_v5  ;;  %v2130_v7 = vld [vmem:[%s654_s30] sm:$0xff]  ;;  %v2132_v8 = vld [vmem:[%s654_s30 + $0x8] sm:$0xff]  ;;  %v1766_v17 = vpack.c.bf16 %v853_v16, %v852_v15  ;;  %v1770_v21 = vpack.c.bf16 %v855_v19, %v854_v18  ;;  %v858_v24 = vld [vmem:[%s2496_s4 + $0x70] sm:$0xff]  ;;  %s2499_s30 = sld [smem:[#allocation13_spill]]  ;;  %s1540_s26 = sshll.u32 %s647_s0, 3 }
  0x24   : > { %1755 = vmatprep.subr.bf16.mxu1 %v1754_v6  ;;  %1632 = vmatprep.mubr.msk.f32.mxu0 %vm665_vm1, %v2130_v7  ;;  %v856_v20 = vld [vmem:[%s2496_s4 + $0x60] sm:$0xff]  ;;  %v857_v22 = vld [vmem:[%s2496_s4 + $0x68] sm:$0xff]  ;;  %v859_v25 = vld [vmem:[%s2496_s4 + $0x78] sm:$0xff]  ;;  %s1949_s3 = smov [#allocation2]  }
  0x25   : > { %1633 = vmatmul.mubr.msk.f32.vlgmr.msra.gmra.mrb[0].mxu0 %vm665_vm1, %v2132_v8  ;;  %v1774_v23 = vpack.c.bf16 %v857_v22, %v856_v20  ;;  %v1778_v26 = vpack.c.bf16 %v859_v25, %v858_v24  ;;  %v1547_v4 = vld [vmem:[%s2504_s23] ss:$0 sm:$0xff]  ;;  %v1090_v24 = vld [vmem:[%s2463_s11 + $0x10] sm:$0xff]  ;;  %v1091_v25 = vld [vmem:[%s2463_s11 + $0x18] sm:$0xff] }
  0x26   : > { %v944_v15 = vld [vmem:[%s2459_s7] sm:$0xf] }
  0x27   : > { %1757 = vmatpush3.bf16.msra.mxu1 %v1754_v6  ;;  %1670 = vmatprep.subr.msk.mxu0 %vm672_vm0, %v944_v15  ;;  %v1088_v16 = vld [vmem:[%s2463_s11] sm:$0xff] }
  0x28   : > { %1759 = vmatprep.subr.bf16.mxu1 %v1758_v11  ;;  %v1543_v28 = vld [vmem:[%s2498_s28] ss:$0 sm:$0xff]  ;;  %1671 = vmatpush3.msk.msra.mxu0 %vm672_vm0, %v944_v15  ;;  %s649_s28 = scalar_lea.vmem [#allocation2], %s1540_s26  ;;  %s1885_s26 = sshll.u32 %s1949_s3, 4  ;;  %s1886_s26 = int_to_ptr.vmem [resolvable:$false] %s1885_s26 }
  0x29   : > { %v786_v37 = vld [vmem:[%s2499_s30] sm:$0x7]  ;;  %s1477_s4 = sshll.u32 %s649_s28, 4  ;;  %s1887_s2 = scalar_lea.vmem %s1886_s26, 256  ;;  %s2412_s4 = int_to_ptr.vmem [resolvable:$true] %s1477_s4 }
  0x2a   : > { %v818_v44 = vrot.slane %v786_v37, %v2181_v34  ;;  %v812_v48 = vrot.slane %v786_v37, %v2187_v38  ;;  %v826_v49 = vrot.slane %v786_v37, %v2190_v39  ;;  %v1548_v19 = vld [vmem:[%s2505_s6] ss:$0 sm:$0xff]  ;;  %s2410_s6 = scalar_lea.hbm %s2473_s21, %s1564_s24  ;;  %s1881_s23 = scalar_lea.vmem %s2412_s4, 128 }
  0x2b   : > { %1761 = vmatpush3.bf16.msra.mxu1 %v1758_v11  ;;  %p1882_p11 = scmp.ne.s32.totalorder %s2412_s4, %s1881_s23  ;;  %p1888_p0 = scmp.lt.s32.totalorder %s2412_s4, %s1886_s26 }
  0x2c   : > { %1763 = vmatprep.subr.bf16.mxu1 %v1762_v14  ;;  %p1889_p1 = scmp.lt.s32.totalorder %s1887_s2, %s1881_s23 }
  0x2d   : > { %p1883_p12 = pnand %p1882_p11, %p2098_p5 }
  0x2e   : > { %p1890_p2 = por %p1889_p1, %p1888_p0 }
  0x2f   : > { %1765 = vmatpush3.bf16.msra.mxu1 %v1762_v14  ;;  %p1884_p13 = pneg %p1883_p12 }
  0x30   : > { %1767 = vmatprep.subr.bf16.mxu1 %v1766_v17 }
  0x31   : > { %p1891_p3 = pnand %p1890_p2, %p1884_p13 }
  0x33   : > { %1769 = vmatpush3.bf16.msra.mxu1 %v1766_v17  ;;  %v1089_v17 = vld [vmem:[%s2463_s11 + $0x8] sm:$0xff] }
  0x34   : > { %1771 = vmatprep.subr.bf16.mxu1 %v1770_v21  ;;  %v1782_v18 = vpack.c.bf16 %v1089_v17, %v1088_v16 }
  0x36   : > { %1783 = vmatprep.subr.bf16.mxu0 %v1782_v18 }
  0x37   : > { %1773 = vmatpush3.bf16.msra.mxu1 %v1770_v21 }
  0x38   : > { %1775 = vmatprep.subr.bf16.mxu1 %v1774_v23 }
  0x3b   : > { %1777 = vmatpush3.bf16.msra.mxu1 %v1774_v23 }
  0x3c   : > { %1779 = vmatprep.subr.bf16.mxu1 %v1778_v26 }
  0x3f   : > { %1781 = vmatpush3.bf16.msra.mxu1 %v1778_v26 }
  0xf8   : > { %v1634_v30 = vpop.f32.mrb[0].mxu0 }
  0xf9   : > { %v748_v32 = vadd.f32 %v1634_v30, %v1543_v28  ;;  %v742_v33 = vpop.f32.mrb[1].mxu0  ;;  %v1092_v30 = vld [vmem:[%s2463_s11 + $0x20] sm:$0xff] }
  0xfa   : > { %v743_v35 = vadd.f32 %v1543_v28, %v742_v33  ;;  %v1786_v28 = vpack.c.bf16 %v1091_v25, %v1090_v24 }
  0xfb   : > { %v752_v36 = vmax.f32 %v748_v32, 0.0  ;;  %v1095_v32 = vld [vmem:[%s2463_s11 + $0x38] sm:$0xff] }
  0xfc   : > { %v751_v40 = vmax.f32 %v743_v35, 0.0  ;;  %v1794_v33 = vpack.c.bf16 %v1095_v32, %v1094_v31  ;;  %v1096_v35 = vld [vmem:[%s2463_s11 + $0x40] sm:$0xff]  ;;  %v1349_v32 = vld [vmem:[%s2469_s17 + $0x8] sm:$0xff] }
  0xfd   : > { %v754_v43 = vmin.f32 %v752_v36, 6.0  ;;  %v1097_v36 = vld [vmem:[%s2463_s11 + $0x48] sm:$0xff]  ;;  %v1348_v31 = vld [vmem:[%s2469_s17] sm:$0xff] }
  0xfe   : > { %v753_v45 = vmin.f32 %v751_v40, 6.0  ;;  %v1798_v37 = vpack.c.bf16 %v1097_v36, %v1096_v35  ;;  %v1098_v40 = vld [vmem:[%s2463_s11 + $0x50] sm:$0xff]  ;;  %v1815_v35 = vpack.c.bf16 %v1349_v32, %v1348_v31  ;;  %v1554_v36 = vld [vmem:[%s2464_s12] ss:$0 sm:$0xff] }
  0xff   : > { %v788_v46 = vrot.slane %v754_v43, 7  ;;  %v799_v47 = vrot.slane %v754_v43, 1  ;;  %v820_v58 = vmul.f32 %v818_v44, %v754_v43  ;;  %v1802_v42 = vpack.c.bf16 %v1099_v41, %v1098_v40  ;;  %v1100_v43 = vld [vmem:[%s2463_s11 + $0x60] sm:$0xff] }
 0x100   : > { %v787_v50 = vrot.slane %v753_v45, 7  ;;  %v798_v51 = vrot.slane %v753_v45, 1  ;;  %v819_v62 = vmul.f32 %v818_v44, %v753_v45  ;;  %v1101_v44 = vld [vmem:[%s2463_s11 + $0x68] sm:$0xff]  ;;  %v1102_v45 = vld [vmem:[%s2463_s11 + $0x70] sm:$0xff] }
 0x102   : > { %v790_v54 = vsel %vm789_vm2, %v787_v50, %v788_v46  ;;  %v791_v55 = vsel %vm789_vm2, %v788_v46, %v787_v50  ;;  %v801_v56 = vsel %vm800_vm3, %v798_v51, %v799_v47  ;;  %v802_v57 = vsel %vm800_vm3, %v799_v47, %v798_v51  ;;  %v1103_v47 = vld [vmem:[%s2463_s11 + $0x78] sm:$0xff] }
 0x103   : > { %v796_v59 = vsel %vm2198_vm4, 0.0, %v791_v55  ;;  %v808_v60 = vsel %vm2202_vm5, 0.0, %v802_v57  ;;  %v814_v61 = vmul.f32 %v812_v48, %v790_v54  ;;  %v827_v3 = vmul.f32 %v826_v49, %v801_v56  ;;  %v1040_v57 = vld [vmem:[%s2461_s9] sm:$0x7] }
 0x104   : > { %v813_v63 = vmul.f32 %v812_v48, %v796_v59  ;;  %v828_v0 = vmul.f32 %v826_v49, %v808_v60  ;;  %v1806_v46 = vpack.c.bf16 %v1101_v44, %v1100_v43  ;;  %v1810_v48 = vpack.c.bf16 %v1103_v47, %v1102_v45  ;;  %v1549_v49 = vld [vmem:[%s2460_s8] ss:$0 sm:$0xff]  ;;  %v1350_v45 = vld [vmem:[%s2469_s17 + $0x10] sm:$0xff] }
 0x105   : > { %v822_v1 = vadd.f32 %v820_v58, %v814_v61 }
 0x106   : > { %v821_v2 = vadd.f32 %v819_v62, %v813_v63  ;;  %v1062_v63 = vrot.slane %v1040_v57, %v2181_v34 }
 0x107   : > { %v830_v5 = vadd.f32 %v828_v0, %v822_v1  ;;  %v1056_v0 = vrot.slane %v1040_v57, %v2187_v38 }
 0x108   : > { %v829_v6 = vadd.f32 %v827_v3, %v821_v2  ;;  %v1070_v3 = vrot.slane %v1040_v57, %v2190_v39  ;;  %v1358_v57 = vld [vmem:[%s2469_s17 + $0x50] sm:$0xff] }
 0x109   : > { %v839_v9 = vadd.f32 %v1547_v4, %v830_v5 }
 0x10a   : > { %v838_v10 = vadd.f32 %v1547_v4, %v829_v6 }
 0x10b   : > { %v841_v11 = vmax.f32 %v839_v9, 0.0 }
 0x10c   : > { %v840_v12 = vmax.f32 %v838_v10, 0.0 }
 0x10d   : > { %v843_v14 = vmin.f32 %v841_v11, 6.0 }
 0x10e   : > { %v842_v13 = vmin.f32 %v840_v12, 6.0 }
 0x110   : > { %1667 = vmatprep.mubr.f32.mxu1 %v842_v13 }
 0x111   : > { %1668 = vmatmul.mubr.f32.vlgmr.msra.gmra.mrb[0].mxu1 %v843_v14 }
 0x1e4   : > { %v1669_v20 = vpop.f32.mrb[0].mxu1 }
 0x1e5   : > { %v939_v21 = vadd.f32 %v1669_v20, %v1548_v19  ;;  %v933_v22 = vpop.f32.mrb[1].mxu1  ;;  %v1553_v20 = vld [vmem:[%s2462_s10] ss:$0 sm:$0xff] }
 0x1e6   : > { %v934_v23 = vadd.f32 %v1548_v19, %v933_v22 }
 0x1e7   : > { %v2245_v27 = vadd.f32 %v939_v21, %v2132_v8 }
 0x1e8   : > { %v2242_v26 = vadd.f32 %v934_v23, %v2130_v7  ;;  %v1093_v7 = vld [vmem:[%s2463_s11 + $0x28] sm:$0xff] }
 0x1e9   : > { %v1790_v8 = vpack.c.bf16 %v1093_v7, %v1092_v30 }
 0x1ea   : > { %1672 = vmatprep.mubr.msk.f32.mxu0 %vm665_vm1, %v2242_v26 }
 0x1eb   : > { %1673 = vmatmul.mubr.msk.f32.vlgmr.msra.gmra.mrb[2].mxu0 %vm665_vm1, %v2245_v27 }
 0x1ec   : > { %1785 = vmatpush3.bf16.msra.mxu0 %v1782_v18 }
 0x1ed   : > { %1787 = vmatprep.subr.bf16.mxu0 %v1786_v28 }
 0x1f0   : > { %1789 = vmatpush3.bf16.msra.mxu0 %v1786_v28 }
 0x1f1   : > { %1791 = vmatprep.subr.bf16.mxu0 %v1790_v8 }
 0x1f4   : > { %1793 = vmatpush3.bf16.msra.mxu0 %v1790_v8  ;;  %v1188_v8 = vld [vmem:[%s2465_s13] sm:$0xf] }
 0x1f5   : > { %1795 = vmatprep.subr.bf16.mxu0 %v1794_v33 }
 0x1f8   : > { %1797 = vmatpush3.bf16.msra.mxu0 %v1794_v33  ;;  %v1945_v33 = vmov 0.0|0.0  }
 0x1f9   : > { %1799 = vmatprep.subr.bf16.mxu0 %v1798_v37  ;;  %1814 = vmatprep.subr.bf16.mxu1 %v1945_v33 }
 0x1fa   : > { %1816 = vmatpush3.bf16.msra.mxu1 %v1815_v35  ;;  %v1559_v35 = vld [vmem:[%s2468_s16] ss:$0 sm:$0xff] }
 0x1fb   : > { %1817 = vmatprep.subr.bf16.mxu1 %v1945_v33  ;;  %v1340_v52 = vcombine.high %v1559_v35, %v1559_v35 }
 0x1fc   : > { %1801 = vmatpush3.bf16.msra.mxu0 %v1798_v37 }
 0x1fd   : > { %1803 = vmatprep.subr.bf16.mxu0 %v1802_v42 }
 0x200   : > { %1805 = vmatpush3.bf16.msra.mxu0 %v1802_v42 }
 0x201   : > { %1807 = vmatprep.subr.bf16.mxu0 %v1806_v46 }
 0x204   : > { %1809 = vmatpush3.bf16.msra.mxu0 %v1806_v46  ;;  %v1351_v46 = vld [vmem:[%s2469_s17 + $0x18] sm:$0xff] }
 0x205   : > { %1811 = vmatprep.subr.bf16.mxu0 %v1810_v48  ;;  %v1818_v47 = vpack.c.bf16 %v1351_v46, %v1350_v45 }
 0x207   : > { %1819 = vmatpush3.bf16.msra.mxu1 %v1818_v47 }
 0x208   : > { %1813 = vmatpush3.bf16.msra.mxu0 %v1810_v48  ;;  %1820 = vmatprep.subr.bf16.mxu1 %v1945_v33 }
 0x209   : > { %1710 = vmatprep.subr.msk.mxu0 %vm672_vm0, %v1188_v8 }
 0x2be   : > { %v1674_v50 = vpop.f32.mrb[2].mxu0 }
 0x2bf   : > { %v1033_v51 = vadd.f32 %v1674_v50, %v1549_v49  ;;  %v1027_v54 = vpop.f32.mrb[3].mxu0  ;;  %v1355_v50 = vld [vmem:[%s2469_s17 + $0x38] sm:$0xff] }
 0x2c0   : > { %v1028_v55 = vadd.f32 %v1549_v49, %v1027_v54  ;;  %v1354_v49 = vld [vmem:[%s2469_s17 + $0x30] sm:$0xff]  ;;  %v1356_v54 = vld [vmem:[%s2469_s17 + $0x40] sm:$0xff] }
 0x2c1   : > { %v1037_v56 = vmax.f32 %v1033_v51, 0.0  ;;  %v1824_v51 = vpack.c.bf16 %v1355_v50, %v1354_v49 }
 0x2c2   : > { %v1036_v58 = vmax.f32 %v1028_v55, 0.0  ;;  %v1357_v55 = vld [vmem:[%s2469_s17 + $0x48] sm:$0xff] }
 0x2c3   : > { %v1039_v59 = vmin.f32 %v1037_v56, 6.0  ;;  %v1827_v56 = vpack.c.bf16 %v1357_v55, %v1356_v54 }
 0x2c4   : > { %v1038_v60 = vmin.f32 %v1036_v58, 6.0  ;;  %v1359_v58 = vld [vmem:[%s2469_s17 + $0x58] sm:$0xff] }
 0x2c5   : > { %v1042_v61 = vrot.slane %v1039_v59, 7  ;;  %v1048_v62 = vrot.slane %v1039_v59, 1  ;;  %v1064_v10 = vmul.f32 %v1062_v63, %v1039_v59  ;;  %v1830_v59 = vpack.c.bf16 %v1359_v58, %v1358_v57 }
 0x2c6   : > { %v1041_v1 = vrot.slane %v1038_v60, 7  ;;  %v1047_v2 = vrot.slane %v1038_v60, 1  ;;  %v1063_v15 = vmul.f32 %v1062_v63, %v1038_v60  ;;  %v1360_v60 = vld [vmem:[%s2469_s17 + $0x60] sm:$0xff] }
 0x2c8   : > { %v1043_v4 = vsel %vm789_vm2, %v1041_v1, %v1042_v61  ;;  %v1044_v5 = vsel %vm789_vm2, %v1042_v61, %v1041_v1  ;;  %v1050_v6 = vsel %vm800_vm3, %v1048_v62, %v1047_v2  ;;  %v1049_v9 = vsel %vm800_vm3, %v1047_v2, %v1048_v62  ;;  %v1361_v61 = vld [vmem:[%s2469_s17 + $0x68] sm:$0xff]  ;;  %v1362_v62 = vld [vmem:[%s2469_s17 + $0x70] sm:$0xff] }
 0x2c9   : > { %v1045_v11 = vsel %vm2198_vm4, 0.0, %v1044_v5  ;;  %v1052_v12 = vsel %vm2202_vm5, 0.0, %v1050_v6  ;;  %v1058_v13 = vmul.f32 %v1056_v0, %v1043_v4  ;;  %v1071_v19 = vmul.f32 %v1070_v3, %v1049_v9 }
 0x2ca   : > { %v1057_v14 = vmul.f32 %v1056_v0, %v1045_v11  ;;  %v1072_v16 = vmul.f32 %v1070_v3, %v1052_v12  ;;  %v1833_v63 = vpack.c.bf16 %v1361_v61, %v1360_v60  ;;  %v1363_v0 = vld [vmem:[%s2469_s17 + $0x78] sm:$0xff]  ;;  %v1947_v1 = vmov 0.0   ;;  %v1555_v3 = vld [vmem:[%s2466_s14] ss:$0 sm:$0xff] }
 0x2cb   : > { %v1066_v17 = vadd.f32 %v1064_v10, %v1058_v13  ;;  %1747 = vmatprep.mubr.msk.f32.mxu1 %vm1946_vm6, %v1947_v1  ;;  %v1836_v2 = vpack.c.bf16 %v1363_v0, %v1362_v62  ;;  %v1284_v11 = vld [vmem:[%s2467_s15] sm:$0x7] }
 0x2cc   : > { %v1065_v18 = vadd.f32 %v1063_v15, %v1057_v14  ;;  %v1948_v14 = vmov 1966171168  }
 0x2cd   : > { %v1074_v21 = vadd.f32 %v1072_v16, %v1066_v17  ;;  %v1320_v15 = vunpack.c.l.s4 %v1948_v14 }
 0x2ce   : > { %v1073_v22 = vadd.f32 %v1071_v19, %v1065_v18  ;;  %v1306_v19 = vrot.slane %v1284_v11, %v2181_v34 }
 0x2cf   : > { %v1083_v23 = vadd.f32 %v1553_v20, %v1074_v21  ;;  %v1314_v21 = vrot.slane %v1284_v11, %v2190_v39 }
 0x2d0   : > { %v1082_v24 = vadd.f32 %v1553_v20, %v1073_v22  ;;  %v1300_v20 = vrot.slane %v1284_v11, %v2187_v38 }
 0x2d1   : > { %v1085_v25 = vmax.f32 %v1083_v23, 0.0 }
 0x2d2   : > { %v1084_v28 = vmax.f32 %v1082_v24, 0.0  ;;  %v1321_v24 = vunpack.c.0.s8 %v1320_v15 }
 0x2d3   : > { %v1087_v7 = vmin.f32 %v1085_v25, 6.0 }
 0x2d4   : > { %v1086_v30 = vmin.f32 %v1084_v28, 6.0 }
 0x2d6   : > { %1707 = vmatprep.mubr.f32.mxu0 %v1086_v30 }
 0x2d7   : > { %1708 = vmatmul.mubr.f32.vlgmr.msra.gmra.mrb[4].mxu0 %v1087_v7 }
 0x2d8   : > { %1711 = vmatpush3.msk.msra.mxu0 %vm672_vm0, %v1188_v8 }
 0x3aa   : > { %v1709_v37 = vpop.f32.mrb[4].mxu0 }
 0x3ab   : > { %v1183_v40 = vadd.f32 %v1709_v37, %v1554_v36  ;;  %v1177_v41 = vpop.f32.mrb[5].mxu0  ;;  %v1324_v37 = vsub.s32 %v1321_v24, %v2177_v29  ;;  %v1560_v29 = vld [vmem:[%s2470_s18] ss:$0 sm:$0xff] }
 0x3ac   : > { %v1178_v42 = vadd.f32 %v1554_v36, %v1177_v41 }
 0x3ad   : > { %v1187_v44 = vadd.f32 %v1183_v40, %v2245_v27  ;;  %v1353_v27 = vld [vmem:[%s2469_s17 + $0x28] sm:$0xff] }
 0x3ae   : > { %v1186_v43 = vadd.f32 %v1178_v42, %v2242_v26  ;;  %v1352_v26 = vld [vmem:[%s2469_s17 + $0x20] sm:$0xff] }
 0x3af   : > { %v1821_v48 = vpack.c.bf16 %v1353_v27, %v1352_v26 }
 0x3b0   : > { %1712 = vmatprep.mubr.msk.f32.mxu0 %vm665_vm1, %v1186_v43 }
 0x3b1   : > { %1713 = vmatmul.mubr.msk.f32.vlgmr.msra.gmra.mrb[6].mxu0 %vm665_vm1, %v1187_v44  ;;  %1822 = vmatpush3.bf16.msra.mxu1 %v1821_v48 }
 0x3b2   : > { %1823 = vmatprep.subr.bf16.mxu1 %v1945_v33 }
 0x3b5   : > { %1825 = vmatpush3.bf16.msra.mxu1 %v1824_v51  ;;  %v1561_v51 = vld [vmem:[%s2471_s19] ss:$0 sm:$0xff] }
 0x3b6   : > { %1826 = vmatprep.subr.bf16.mxu1 %v1945_v33 }
 0x3b9   : > { %1828 = vmatpush3.bf16.msra.mxu1 %v1827_v56  ;;  %v1562_v56 = vld [vmem:[%s2472_s20] ss:$0 sm:$0xff] }
 0x3ba   : > { %1829 = vmatprep.subr.bf16.mxu1 %v1945_v33 }
 0x3bd   : > { %1831 = vmatpush3.bf16.msra.mxu1 %v1830_v59 }
 0x3be   : > { %1832 = vmatprep.subr.bf16.mxu1 %v1945_v33 }
 0x3c1   : > { %1834 = vmatpush3.bf16.msra.mxu1 %v1833_v63 }
 0x3c2   : > { %1835 = vmatprep.subr.bf16.mxu1 %v1945_v33 }
 0x3c5   : > { %1837 = vmatpush3.bf16.msra.mxu1 %v1836_v2 }
 0x484   : > { %v1714_v4 = vpop.f32.mrb[6].mxu0 }
 0x485   : > { %v1277_v5 = vadd.f32 %v1714_v4, %v1555_v3  ;;  %v1271_v6 = vpop.f32.mrb[7].mxu0 }
 0x486   : > { %v1272_v9 = vadd.f32 %v1555_v3, %v1271_v6 }
 0x487   : > { %v1281_v10 = vmax.f32 %v1277_v5, 0.0 }
 0x488   : > { %v1280_v12 = vmax.f32 %v1272_v9, 0.0 }
 0x489   : > { %v1283_v13 = vmin.f32 %v1281_v10, 6.0 }
 0x48a   : > { %v1282_v16 = vmin.f32 %v1280_v12, 6.0 }
 0x48b   : > { %v1286_v17 = vrot.slane %v1283_v13, 7  ;;  %v1292_v18 = vrot.slane %v1283_v13, 1  ;;  %v1308_v34 = vmul.f32 %v1306_v19, %v1283_v13 }
 0x48c   : > { %v1285_v22 = vrot.slane %v1282_v16, 7  ;;  %v1291_v23 = vrot.slane %v1282_v16, 1  ;;  %v1307_v32 = vmul.f32 %v1306_v19, %v1282_v16 }
 0x48e   : > { %v1287_v25 = vsel %vm789_vm2, %v1285_v22, %v1286_v17  ;;  %v1288_v28 = vsel %vm789_vm2, %v1286_v17, %v1285_v22  ;;  %v1293_v30 = vsel %vm800_vm3, %v1291_v23, %v1292_v18  ;;  %v1294_v7 = vsel %vm800_vm3, %v1292_v18, %v1291_v23 }
 0x48f   : > { %v1289_v38 = vsel %vm2198_vm4, 0.0, %v1288_v28  ;;  %v1296_v39 = vsel %vm2202_vm5, 0.0, %v1294_v7  ;;  %v1302_v8 = vmul.f32 %v1300_v20, %v1287_v25  ;;  %v1315_v41 = vmul.f32 %v1314_v21, %v1293_v30 }
 0x490   : > { %v1301_v31 = vmul.f32 %v1300_v20, %v1289_v38  ;;  %v1316_v33 = vmul.f32 %v1314_v21, %v1296_v39 }
 0x491   : > { %v1310_v36 = vadd.f32 %v1308_v34, %v1302_v8 }
 0x492   : > { %v1309_v40 = vadd.f32 %v1307_v32, %v1301_v31 }
 0x493   : > { %v1318_v42 = vadd.f32 %v1316_v33, %v1310_v36 }
 0x494   : > { %v1317_v43 = vadd.f32 %v1315_v41, %v1309_v40 }
 0x495   : > { %v1332_v44 = vrot.slane %v1318_v42, %v1324_v37 }
 0x496   : > { %v1325_v53 = vrot.slane %v1317_v43, %v1324_v37 }
 0x497   : > { %v1343_v45 = vadd.f32 %v1340_v52, %v1332_v44 }
 0x498   : > { %v1342_v46 = vadd.f32 %v1559_v35, %v1325_v53 }
 0x499   : > { %v1345_v47 = vmax.f32 %v1343_v45, 0.0 }
 0x49a   : > { %v1344_v26 = vmax.f32 %v1342_v46, 0.0 }
 0x49b   : > { %v1347_v27 = vmin.f32 %v1345_v47, 6.0 }
 0x49c   : > { %v1346_v48 = vmin.f32 %v1344_v26, 6.0 }
 0x49e   : > { %v1373_v49 = vcombine.low %v1346_v48, %v1347_v27 }
 0x4a0   : > { %1748 = vmatmul.mubr.f32.vlgmr.msra.gmra.mrb[2].mxu1 %v1373_v49 }
 0x573   : > { %v1441_v50 = vpop.f32.mrb[2].mxu1 }
 0x574   : > { %v1442_v54 = vadd.f32 %v1560_v29, %v1441_v50  ;;  %v1749_v55 = vpop.f32.mrb[3].mxu1 }
 0x576   : > { %v1452_v57 = vmul.f32 %v1561_v51, %v1442_v54 }
 0x578   : > { %v1460_v58 = vadd.f32 %v1562_v56, %v1452_v57 }
 0x57a   : > { %1462 = vst.msk [vmem:[%s649_s28] sm:$0xff] %vm1461_vm7, %v1460_v58 }
 0x57b   : > { %1894 = shalt.err (!%p1891_p3)
}
 0x57c   : > { %s1895_s0 = scalar_lea.hbm %s2410_s6, 128  ;;  %s1899_s28 = scalar_lea.hbm %s2473_s21, 256 }
 0x57d   : > { %p1896_p4 = scmp.ne.s32.totalorder %s2410_s6, %s1895_s0  ;;  %p1900_p9 = scmp.lt.u32.totalorder %s2410_s6, %s2473_s21 }
 0x57e   : > { %p1901_p10 = scmp.lt.u32.totalorder %s1899_s28, %s1895_s0  ;;  %p1903_p12 = scmp.lt.u32.totalorder %s1895_s0, %s2410_s6 }
 0x57f   : > { %p1897_p7 = pnand %p1896_p4, %p2098_p5 }
 0x580   : > { %p1902_p11 = por %p1901_p10, %p1900_p9 }
 0x581   : > { %p1898_p8 = pneg %p1897_p7 }
 0x582   : > { %p1904_p13 = por %p1903_p12, %p1902_p11 }
 0x584   : > { %p1905_p0 = pnand %p1904_p13, %p1898_p8 }
 0x586   : > { %1908 = shalt.err (!%p1905_p0)
}
 0x587   : > { %1838 = dma.vmem_to_hbm [thread:$0]  (%p2098_p5), %s2412_s4, 128, %s2410_s6, %s1464_s22  }
 0x588 PF: > { %s2506_s23 = sld [smem:[#allocation5_spill]]  ;;  %p1844_p1 = scmp.ge.s32.totalorder %s1943_s27, 2 }
 0x58a   : > { %p1841_p2 = pnand %p1844_p1, %p2102_p6 }
 0x58e   : > { %s1489_s26 = sand.u32 1, %s2506_s23  }
 0x58f   : > { %s1490_s2 = scalar_lea.sflag [#allocation3], %s1489_s26 }
 0x590   : > { %1926 = dma.done.wait (!%p1841_p2), %s1490_s2, 128  }
 0x591   : > { %1928 = vsyncadd (!%p1841_p2), %s1490_s2, 4294967168  ;;  %s2508_s27 = sld [smem:[#allocation7_spill]]  ;;  %s2509_s0 = sld [smem:[#allocation6_spill]] }
 0x592   : > { %s2510_s26 = sld [smem:[#allocation8_spill]]  ;;  %s2511_s2 = smov %s1935_s25 }
 0x597   : > { %p31_p3 = scmp.ge.s32.totalorder %s2508_s27, 4   ;;  %s2512_s25 = smov %s2509_s0 }
 0x599   :  { %33 = sbr.rel (!%p31_p3) target bundleno = 11 (0xb), region = 139 }
 0x5a0   :  { %1495 = vsyncpa [#allocation3], 1 }
 0x5a1   :  { %1497 = vsyncpa [#allocation3 + $0x1], 1 }

</bundles_post_ra>
